<compile_context>
chip_gen: v7x
topology: tpu7x:2x2x1
jax: 0.10.0
libtpu: 0.0.40
codegen_flags: <defaults>
</compile_context>

<pallas_src>
import jax
import jax.numpy as jnp
from jax.experimental import pallas as pl
from jax.experimental.pallas import tpu as pltpu


def _graph_agg_kernel(sel_ref, a_ref, o_ref):
    """Single fused step: gather all k neighbors for all m queries at once.

    sel_ref : (1, k*scale*m) int32   selector row per output column:
              sel[j*scale*m + s0*m + i] = s0*n + idx[i, j]
    a_ref   : (ncomp, fs, scale*n) bf16   reordered yd, pre-split into bf16
              components (3 for f32 inputs -> exact gather, 1 for bf16 inputs)
    o_ref   : (k*fs, scale*m)        final-layout output
    """
    ncomp, fs, sn = a_ref.shape
    cols = sel_ref.shape[1]                  # k * scale * m
    sm = o_ref.shape[1]                      # scale * m
    k = o_ref.shape[0] // fs

    # One-hot selector built directly in the matmul dtype (single compare+cast).
    # Exactly one 1 per column; an out-of-range selector simply yields zeros,
    # so the gather can never fault.
    onehot = (jax.lax.broadcasted_iota(jnp.int32, (sn, cols), 0)
              == sel_ref[...]).astype(jnp.bfloat16)

    # MXU gather: one dot per (pre-split) bf16 component of A.  Each output
    # element receives exactly one row per component, so the f32 accumulation
    # reconstructs f32 inputs exactly (up to bf16-subnormal residual flushes).
    g = jnp.dot(a_ref[0], onehot, preferred_element_type=jnp.float32)
    for c in range(1, ncomp):                # static, ncomp in {1, 3}
        g = g + jnp.dot(a_ref[c], onehot, preferred_element_type=jnp.float32)

    # g[c0, j*sm + s0*m + i] == yd[idx[i, j], c0*scale + s0]: each neighbor j
    # is one full-width row-block store in the final layout (no s0 strips).
    for j in range(k):                       # static, tiny (k neighbors)
        o_ref[j * fs:(j + 1) * fs, :] = (
            g[:, j * sm:(j + 1) * sm].astype(o_ref.dtype))


def graph_aggregation_forward(y_patch, yd_patch, idx_k, *, scale, k):
    """Pallas implementation of GraphAggregation.forward."""
    m = y_patch.shape[0]
    yd = yd_patch.reshape(m, -1)                 # (n, f), n == m by construction
    n, f = yd.shape
    if f % scale != 0:
        raise ValueError(f"feature dim {f} must be divisible by scale={scale}")
    fs = f // scale
    if k > 1 and fs % 8 != 0:
        raise ValueError(f"f//scale={fs} must be a multiple of 8 (sublane tiling)")
    idx = idx_k.reshape(m, k)
    out_dtype = yd.dtype

    # ---- tiny one-time wrapper prep on the SMALL operands only; the k-times
    # ---- larger gathered tensor never leaves the kernel in an intermediate
    # ---- layout.
    # A reordered so the matmul emits the final layout directly:
    #   a_ro[c0, s0*n + r] = yd[r, c0*scale + s0]
    a_ro = jnp.transpose(yd.reshape(n, fs, scale), (1, 2, 0)).reshape(fs, scale * n)

    # Hoisted f32 -> 3x bf16 split (review item: no per-grid-step recompute).
    if a_ro.dtype == jnp.bfloat16:
        a_stack = a_ro[None]                                   # (1, fs, scale*n)
    else:
        a32 = a_ro.astype(jnp.float32)
        a0 = a32.astype(jnp.bfloat16)
        r1 = a32 - a0.astype(jnp.float32)
        a1 = r1.astype(jnp.bfloat16)
        a2 = (r1 - a1.astype(jnp.float32)).astype(jnp.bfloat16)
        a_stack = jnp.stack([a0, a1, a2])                      # (3, fs, scale*n)
    ncomp = a_stack.shape[0]

    # Block-diagonal selector index per output column:
    #   sel[j, s0, i] = s0*n + clamp(idx[i, j])
    idx_c = jnp.clip(idx, 0, n - 1).astype(jnp.int32)          # (m, k)
    sel = (jnp.arange(scale, dtype=jnp.int32)[None, :, None] * n
           + jnp.transpose(idx_c, (1, 0))[:, None, :])         # (k, scale, m)
    sel = sel.reshape(1, k * scale * m)

    # ---- explicit VMEM budget from the real footprint (no flat 40 MiB cap).
    cols = k * scale * m
    sn = scale * n
    a_elt = jnp.dtype(a_stack.dtype).itemsize
    o_elt = jnp.dtype(out_dtype).itemsize
    need = (ncomp * fs * sn * a_elt                 # A, single-buffered
            + 2 * cols * 4                          # selector, double-buffered
            + 2 * (k * fs) * (scale * m) * o_elt    # output, double-buffered
            + sn * cols * (4 + 2)                   # iota (i32) + one-hot (bf16)
            + fs * cols * 4)                        # f32 matmul accumulator
    try:
        kind = jax.devices()[0].device_kind.lower()
    except Exception:
        kind = ""
    cap = (56 << 20) if "7" in kind else (112 << 20)   # v7x: 64 MiB physical
    if need + (2 << 20) > cap:
        # TODO(synk): add an m-tile grid axis for very large m (block the
        # selector / one-hot / output columns per tile, view the output as
        # (k*fs, scale, m), mark the tile axis "parallel" for v7x's 2 TCs).
        raise ValueError(
            f"problem needs ~{need} B VMEM (> {cap} B); requires the m-tiled variant")
    vmem_bytes = int(min(max(need + (2 << 20), 16 << 20), cap))

    def _call(a_spec):
        return pl.pallas_call(
            _graph_agg_kernel,
            out_shape=jax.ShapeDtypeStruct((k * fs, scale * m), out_dtype),
            grid=(1,),                               # fully fused: one step
            in_specs=[
                pl.BlockSpec((1, cols), lambda i: (0, 0)),   # selector (VMEM)
                a_spec,                                      # resident A
            ],
            # Final (k*fs, scale*m) layout written directly; only a free
            # leading-dim reshape remains outside the kernel.
            out_specs=pl.BlockSpec((k * fs, scale * m), lambda i: (0, 0)),
            compiler_params=pltpu.CompilerParams(
                dimension_semantics=("arbitrary",),  # single step; nothing to shard
                vmem_limit_bytes=vmem_bytes,
            ),
        )(sel, a_stack)

    try:
        # Constant index map -> a second pipeline buffer for A is dead weight.
        out2d = _call(pl.BlockSpec((ncomp, fs, sn), lambda i: (0, 0, 0),
                                   pipeline_mode=pl.Buffered(1)))
    except Exception:
        # Compatibility fallback: identical kernel, default buffering for A
        # (only used if this jax build rejects pipeline_mode=pl.Buffered(1)).
        out2d = _call(pl.BlockSpec((ncomp, fs, sn), lambda i: (0, 0, 0)))

    # Pure metadata reshape (adds the leading batch dim); no data movement.
    return out2d.reshape(1, k * fs, m * scale)


def torch_reference(y_patch, yd_patch, idx_k, *, scale, k):
    """Step-by-step jnp transcription of the PyTorch forward (for checking)."""
    y = y_patch[None]                                       # (1, m, f_y)
    yd = yd_patch[None].reshape(1, y.shape[1], -1)          # (1, n, f)
    b, n, f = yd.shape
    m = idx_k.shape[1]
    yd_p = jnp.transpose(yd, (0, 2, 1))                     # (b, f, n)
    yd_e = jnp.broadcast_to(yd_p[:, None], (b, m, f, n))
    idx_e = jnp.broadcast_to(idx_k[:, :, None, :], (b, m, f, k))
    z = jnp.take_along_axis(yd_e, idx_e, axis=3)            # (b, m, f, k)
    z = jnp.transpose(z, (0, 3, 2, 1))                      # (b, k, f, m)
    z = z.reshape(b, k, f // scale, scale, m)
    return z.reshape(b, k * (f // scale), m * scale)


if __name__ == "__main__":
    # Module hyper-params (patchsize/stride/padding unused in forward).
    scale, k_nn = 2, 4
    m, f = 16, 32                      # n == m by construction of the forward

    key = jax.random.PRNGKey(0)
    k1, k2, k3 = jax.random.split(key, 3)
    y_patch = jax.random.normal(k1, (m, f), dtype=jnp.float32)
    yd_patch = jax.random.normal(k2, (m, f), dtype=jnp.float32)
    idx_k = jax.random.randint(k3, (1, m, k_nn), 0, m, dtype=jnp.int32)

    # f32 path (3-component exact gather).
    out = graph_aggregation_forward(y_patch, yd_patch, idx_k, scale=scale, k=k_nn)
    out = jax.block_until_ready(out)
    ref = torch_reference(y_patch, yd_patch, idx_k, scale=scale, k=k_nn)
    assert out.shape == (1, k_nn * (f // scale), m * scale), out.shape
    assert jnp.allclose(out, ref, rtol=1e-5, atol=1e-6), "f32 mismatch vs reference"

    # bf16 path (single-component native-dtype gather).
    yd_bf = yd_patch.astype(jnp.bfloat16)
    out_bf = graph_aggregation_forward(y_patch, yd_bf, idx_k, scale=scale, k=k_nn)
    out_bf = jax.block_until_ready(out_bf)
    ref_bf = torch_reference(y_patch, yd_bf, idx_k, scale=scale, k=k_nn)
    assert out_bf.dtype == jnp.bfloat16
    assert jnp.allclose(out_bf.astype(jnp.float32), ref_bf.astype(jnp.float32),
                        rtol=1e-2, atol=1e-2), "bf16 mismatch vs reference"

    print("KERNEL_OK")
</pallas_src>

<mosaic_0001>
module attributes {stable_mosaic.version = 11 : i64} {
  func.func @_graph_agg_kernel(%arg0: i32, %arg1: memref<1x128xi32, #tpu.memory_space<vmem>>, %arg2: memref<3x16x32xbf16, #tpu.memory_space<vmem>>, %arg3: memref<64x32xf32, #tpu.memory_space<vmem>>) attributes {dimension_semantics = [#tpu.dimension_semantics<arbitrary>], iteration_bounds = array<i64: 1>, scalar_prefetch = 0 : i64, scratch_operands = 0 : i64, tpu.core_type = #tpu.core_type<tc>, window_params = [{pipeline_mode = #tpu.pipeline_mode<synchronous>, transform_indices = @transform_0, window_bounds = array<i64: 1, 128>}, {pipeline_mode = #tpu.pipeline_mode<synchronous>, transform_indices = @transform_1, window_bounds = array<i64: 3, 16, 32>}, {pipeline_mode = #tpu.pipeline_mode<synchronous>, transform_indices = @transform_2, window_bounds = array<i64: 64, 32>}]} {
    %0 = tpu.iota {dimensions = array<i32: 0>} : vector<32x128xi32>
    %c0 = arith.constant 0 : index
    %c0_0 = arith.constant 0 : index
    %1 = vector.load %arg1[%c0, %c0_0] : memref<1x128xi32, #tpu.memory_space<vmem>>, vector<1x128xi32>
    %2 = vector.broadcast %1 : vector<1x128xi32> to vector<32x128xi32>
    %3 = arith.cmpi eq, %0, %2 : vector<32x128xi32>
    %4 = arith.extui %3 : vector<32x128xi1> to vector<32x128xi32>
    %5 = arith.sitofp %4 : vector<32x128xi32> to vector<32x128xf32>
    %6 = arith.truncf %5 : vector<32x128xf32> to vector<32x128xbf16>
    %c0_1 = arith.constant 0 : index
    %c0_2 = arith.constant 0 : index
    %c0_3 = arith.constant 0 : index
    %7 = vector.load %arg2[%c0_1, %c0_2, %c0_3] : memref<3x16x32xbf16, #tpu.memory_space<vmem>>, vector<1x16x32xbf16>
    %8 = vector.shape_cast %7 : vector<1x16x32xbf16> to vector<16x32xbf16>
    %cst = arith.constant dense<0.000000e+00> : vector<16x128xf32>
    %9 = tpu.matmul %8, %6, %cst {dimension_numbers = #tpu.dot_dimension_numbers<[1], [0], [0], [1], [0, 0, 1, 1], [], []>} : vector<16x32xbf16>, vector<32x128xbf16>, vector<16x128xf32> -> vector<16x128xf32>
    %c1 = arith.constant 1 : index
    %c0_4 = arith.constant 0 : index
    %c0_5 = arith.constant 0 : index
    %10 = vector.load %arg2[%c1, %c0_4, %c0_5] : memref<3x16x32xbf16, #tpu.memory_space<vmem>>, vector<1x16x32xbf16>
    %11 = vector.shape_cast %10 : vector<1x16x32xbf16> to vector<16x32xbf16>
    %cst_6 = arith.constant dense<0.000000e+00> : vector<16x128xf32>
    %12 = tpu.matmul %11, %6, %cst_6 {dimension_numbers = #tpu.dot_dimension_numbers<[1], [0], [0], [1], [0, 0, 1, 1], [], []>} : vector<16x32xbf16>, vector<32x128xbf16>, vector<16x128xf32> -> vector<16x128xf32>
    %13 = arith.addf %9, %12 : vector<16x128xf32>
    %c2 = arith.constant 2 : index
    %c0_7 = arith.constant 0 : index
    %c0_8 = arith.constant 0 : index
    %14 = vector.load %arg2[%c2, %c0_7, %c0_8] : memref<3x16x32xbf16, #tpu.memory_space<vmem>>, vector<1x16x32xbf16>
    %15 = vector.shape_cast %14 : vector<1x16x32xbf16> to vector<16x32xbf16>
    %cst_9 = arith.constant dense<0.000000e+00> : vector<16x128xf32>
    %16 = tpu.matmul %15, %6, %cst_9 {dimension_numbers = #tpu.dot_dimension_numbers<[1], [0], [0], [1], [0, 0, 1, 1], [], []>} : vector<16x32xbf16>, vector<32x128xbf16>, vector<16x128xf32> -> vector<16x128xf32>
    %17 = arith.addf %13, %16 : vector<16x128xf32>
    %18 = vector.extract_strided_slice %17 {offsets = [0, 0], sizes = [16, 32], strides = [1, 1]} : vector<16x128xf32> to vector<16x32xf32>
    %c0_10 = arith.constant 0 : index
    %c0_11 = arith.constant 0 : index
    %19 = vector.load %arg3[%c0_10, %c0_11] : memref<64x32xf32, #tpu.memory_space<vmem>>, vector<16x32xf32>
    tpu.vector_store %arg3[%c0_10, %c0_11], %18 {strides = array<i32>} : memref<64x32xf32, #tpu.memory_space<vmem>>, vector<16x32xf32>,
    %20 = vector.extract_strided_slice %17 {offsets = [0, 32], sizes = [16, 32], strides = [1, 1]} : vector<16x128xf32> to vector<16x32xf32>
    %c16 = arith.constant 16 : index
    %c0_12 = arith.constant 0 : index
    %21 = vector.load %arg3[%c16, %c0_12] : memref<64x32xf32, #tpu.memory_space<vmem>>, vector<16x32xf32>
    tpu.vector_store %arg3[%c16, %c0_12], %20 {strides = array<i32>} : memref<64x32xf32, #tpu.memory_space<vmem>>, vector<16x32xf32>,
    %22 = vector.extract_strided_slice %17 {offsets = [0, 64], sizes = [16, 32], strides = [1, 1]} : vector<16x128xf32> to vector<16x32xf32>
    %c32 = arith.constant 32 : index
    %c0_13 = arith.constant 0 : index
    %23 = vector.load %arg3[%c32, %c0_13] : memref<64x32xf32, #tpu.memory_space<vmem>>, vector<16x32xf32>
    tpu.vector_store %arg3[%c32, %c0_13], %22 {strides = array<i32>} : memref<64x32xf32, #tpu.memory_space<vmem>>, vector<16x32xf32>,
    %24 = vector.extract_strided_slice %17 {offsets = [0, 96], sizes = [16, 32], strides = [1, 1]} : vector<16x128xf32> to vector<16x32xf32>
    %c48 = arith.constant 48 : index
    %c0_14 = arith.constant 0 : index
    %25 = vector.load %arg3[%c48, %c0_14] : memref<64x32xf32, #tpu.memory_space<vmem>>, vector<16x32xf32>
    tpu.vector_store %arg3[%c48, %c0_14], %24 {strides = array<i32>} : memref<64x32xf32, #tpu.memory_space<vmem>>, vector<16x32xf32>,
    return
  }
  func.func @transform_0(%arg0: i32) -> (i32, i32) {
    %c0_i32 = arith.constant 0 : i32
    %c0_i32_0 = arith.constant 0 : i32
    %c0_i32_1 = arith.constant 0 : i32
    return %c0_i32, %c0_i32_0 : i32, i32
  }
  func.func @transform_1(%arg0: i32) -> (i32, i32, i32) {
    %c0_i32 = arith.constant 0 : i32
    %c0_i32_0 = arith.constant 0 : i32
    %c0_i32_1 = arith.constant 0 : i32
    %c0_i32_2 = arith.constant 0 : i32
    return %c0_i32, %c0_i32_0, %c0_i32_1 : i32, i32, i32
  }
  func.func @transform_2(%arg0: i32) -> (i32, i32) {
    %c0_i32 = arith.constant 0 : i32
    %c0_i32_0 = arith.constant 0 : i32
    %c0_i32_1 = arith.constant 0 : i32
    return %c0_i32, %c0_i32_0 : i32, i32
  }
}

module attributes {stable_mosaic.version = 11 : i64} {
  func.func @_graph_agg_kernel(%arg0: i32, %arg1: memref<1x128xi32, #tpu.memory_space<vmem>>, %arg2: memref<3x16x32xbf16, #tpu.memory_space<vmem>>, %arg3: memref<64x32xf32, #tpu.memory_space<vmem>>) attributes {dimension_semantics = [#tpu.dimension_semantics<arbitrary>], iteration_bounds = array<i64: 1>, scalar_prefetch = 0 : i64, scratch_operands = 0 : i64, tpu.core_type = #tpu.core_type<tc>, window_params = [{pipeline_mode = #tpu.pipeline_mode<synchronous>, transform_indices = @transform_0, window_bounds = array<i64: 1, 128>}, {pipeline_mode = #tpu.pipeline_mode<synchronous>, transform_indices = @transform_1, window_bounds = array<i64: 3, 16, 32>}, {pipeline_mode = #tpu.pipeline_mode<synchronous>, transform_indices = @transform_2, window_bounds = array<i64: 64, 32>}]} {
    %0 = tpu.iota {dimensions = array<i32: 0>} : vector<32x128xi32>
    %c0 = arith.constant 0 : index
    %c0_0 = arith.constant 0 : index
    %1 = vector.load %arg1[%c0, %c0_0] : memref<1x128xi32, #tpu.memory_space<vmem>>, vector<1x128xi32>
    %2 = vector.broadcast %1 : vector<1x128xi32> to vector<32x128xi32>
    %3 = arith.cmpi eq, %0, %2 : vector<32x128xi32>
    %4 = arith.extui %3 : vector<32x128xi1> to vector<32x128xi32>
    %5 = arith.sitofp %4 : vector<32x128xi32> to vector<32x128xf32>
    %6 = arith.truncf %5 : vector<32x128xf32> to vector<32x128xbf16>
    %c0_1 = arith.constant 0 : index
    %c0_2 = arith.constant 0 : index
    %c0_3 = arith.constant 0 : index
    %7 = vector.load %arg2[%c0_1, %c0_2, %c0_3] : memref<3x16x32xbf16, #tpu.memory_space<vmem>>, vector<1x16x32xbf16>
    %8 = vector.shape_cast %7 : vector<1x16x32xbf16> to vector<16x32xbf16>
    %cst = arith.constant dense<0.000000e+00> : vector<16x128xf32>
    %9 = tpu.matmul %8, %6, %cst {dimension_numbers = #tpu.dot_dimension_numbers<[1], [0], [0], [1], [0, 0, 1, 1], [], []>} : vector<16x32xbf16>, vector<32x128xbf16>, vector<16x128xf32> -> vector<16x128xf32>
    %c1 = arith.constant 1 : index
    %c0_4 = arith.constant 0 : index
    %c0_5 = arith.constant 0 : index
    %10 = vector.load %arg2[%c1, %c0_4, %c0_5] : memref<3x16x32xbf16, #tpu.memory_space<vmem>>, vector<1x16x32xbf16>
    %11 = vector.shape_cast %10 : vector<1x16x32xbf16> to vector<16x32xbf16>
    %cst_6 = arith.constant dense<0.000000e+00> : vector<16x128xf32>
    %12 = tpu.matmul %11, %6, %cst_6 {dimension_numbers = #tpu.dot_dimension_numbers<[1], [0], [0], [1], [0, 0, 1, 1], [], []>} : vector<16x32xbf16>, vector<32x128xbf16>, vector<16x128xf32> -> vector<16x128xf32>
    %13 = arith.addf %9, %12 : vector<16x128xf32>
    %c2 = arith.constant 2 : index
    %c0_7 = arith.constant 0 : index
    %c0_8 = arith.constant 0 : index
    %14 = vector.load %arg2[%c2, %c0_7, %c0_8] : memref<3x16x32xbf16, #tpu.memory_space<vmem>>, vector<1x16x32xbf16>
    %15 = vector.shape_cast %14 : vector<1x16x32xbf16> to vector<16x32xbf16>
    %cst_9 = arith.constant dense<0.000000e+00> : vector<16x128xf32>
    %16 = tpu.matmul %15, %6, %cst_9 {dimension_numbers = #tpu.dot_dimension_numbers<[1], [0], [0], [1], [0, 0, 1, 1], [], []>} : vector<16x32xbf16>, vector<32x128xbf16>, vector<16x128xf32> -> vector<16x128xf32>
    %17 = arith.addf %13, %16 : vector<16x128xf32>
    %18 = vector.extract_strided_slice %17 {offsets = [0, 0], sizes = [16, 32], strides = [1, 1]} : vector<16x128xf32> to vector<16x32xf32>
    %c0_10 = arith.constant 0 : index
    %c0_11 = arith.constant 0 : index
    %19 = vector.load %arg3[%c0_10, %c0_11] : memref<64x32xf32, #tpu.memory_space<vmem>>, vector<16x32xf32>
    tpu.vector_store %arg3[%c0_10, %c0_11], %18 {strides = array<i32>} : memref<64x32xf32, #tpu.memory_space<vmem>>, vector<16x32xf32>,
    %20 = vector.extract_strided_slice %17 {offsets = [0, 32], sizes = [16, 32], strides = [1, 1]} : vector<16x128xf32> to vector<16x32xf32>
    %c16 = arith.constant 16 : index
    %c0_12 = arith.constant 0 : index
    %21 = vector.load %arg3[%c16, %c0_12] : memref<64x32xf32, #tpu.memory_space<vmem>>, vector<16x32xf32>
    tpu.vector_store %arg3[%c16, %c0_12], %20 {strides = array<i32>} : memref<64x32xf32, #tpu.memory_space<vmem>>, vector<16x32xf32>,
    %22 = vector.extract_strided_slice %17 {offsets = [0, 64], sizes = [16, 32], strides = [1, 1]} : vector<16x128xf32> to vector<16x32xf32>
    %c32 = arith.constant 32 : index
    %c0_13 = arith.constant 0 : index
    %23 = vector.load %arg3[%c32, %c0_13] : memref<64x32xf32, #tpu.memory_space<vmem>>, vector<16x32xf32>
    tpu.vector_store %arg3[%c32, %c0_13], %22 {strides = array<i32>} : memref<64x32xf32, #tpu.memory_space<vmem>>, vector<16x32xf32>,
    %24 = vector.extract_strided_slice %17 {offsets = [0, 96], sizes = [16, 32], strides = [1, 1]} : vector<16x128xf32> to vector<16x32xf32>
    %c48 = arith.constant 48 : index
    %c0_14 = arith.constant 0 : index
    %25 = vector.load %arg3[%c48, %c0_14] : memref<64x32xf32, #tpu.memory_space<vmem>>, vector<16x32xf32>
    tpu.vector_store %arg3[%c48, %c0_14], %24 {strides = array<i32>} : memref<64x32xf32, #tpu.memory_space<vmem>>, vector<16x32xf32>,
    return
  }
  func.func @transform_0(%arg0: i32) -> (i32, i32) {
    %c0_i32 = arith.constant 0 : i32
    %c0_i32_0 = arith.constant 0 : i32
    %c0_i32_1 = arith.constant 0 : i32
    return %c0_i32, %c0_i32_0 : i32, i32
  }
  func.func @transform_1(%arg0: i32) -> (i32, i32, i32) {
    %c0_i32 = arith.constant 0 : i32
    %c0_i32_0 = arith.constant 0 : i32
    %c0_i32_1 = arith.constant 0 : i32
    %c0_i32_2 = arith.constant 0 : i32
    return %c0_i32, %c0_i32_0, %c0_i32_1 : i32, i32, i32
  }
  func.func @transform_2(%arg0: i32) -> (i32, i32) {
    %c0_i32 = arith.constant 0 : i32
    %c0_i32_0 = arith.constant 0 : i32
    %c0_i32_1 = arith.constant 0 : i32
    return %c0_i32, %c0_i32_0 : i32, i32
  }
}

</mosaic_0001>

<bundles_post_ra>
// kernel: tpu_custom_call.1
= control target key start
LH: loop header
LB: loop body
LE: loop exit
PB: predicated region body
PF: predicated region fallthrough
CT: control target
= control target key end

     0   :  { %7 = vsyncpa [#allocation3], 0  ;;  %s473_s0 = inlined_call_operand.hbm [shape: s32[1,128], index: 0, kind: input, shape index: {}]   ;;  %s474_s1 = inlined_call_operand.hbm [shape: bf16[3,16,32], index: 1, kind: input, shape index: {}]   ;;  %s475_s2 = inlined_call_operand.vmem [shape: f32[64,32], index: 2, kind: output, shape index: {}]  }
   0x1   :  { %8 = vsyncpa [#allocation5], 0  ;;  %s376_s9 = smov [#allocation2]   ;;  %s377_s11 = smov [#allocation4]  }
   0x2   :  { %s15_s10 = sshll.u32 %s376_s9, 4  ;;  %s24_s12 = sshll.u32 %s377_s11, 4  ;;  %s16_s10 = int_to_ptr.vmem [resolvable:$true] %s15_s10  ;;  %s400_s12 = int_to_ptr.vmem [resolvable:$true] %s24_s12 }
   0x3   :  { %s328_s15 = scalar_lea.hbm %s473_s0, 16 }
   0x4   :  { %p329_p0 = scmp.ne.s32.totalorder %s473_s0, %s328_s15  ;;  %p332_p1 = scmp.lt.u32.totalorder %s328_s15, %s473_s0 }
   0x6   :  { %p334_p2 = pnand %p332_p1, %p329_p0 }
   0x8   :  { %337 = shalt.err (!%p334_p2)
}
   0x9   :  { %s338_s20 = scalar_lea.vmem %s16_s10, 16  ;;  %s342_s21 = scalar_lea.vmem %s16_s10, 32 }
   0xa   :  { %p339_p3 = scmp.ne.s32.totalorder %s16_s10, %s338_s20  ;;  %p343_p4 = scmp.lt.s32.totalorder %s16_s10, %s16_s10 }
   0xb   :  { %p344_p5 = scmp.lt.s32.totalorder %s342_s21, %s338_s20 }
   0xd   :  { %p345_p6 = por %p344_p5, %p343_p4 }
   0xf   :  { %p346_p7 = pnand %p345_p6, %p339_p3 }
  0x11   :  { %349 = shalt.err (!%p346_p7)
}
  0x12   :  { %18 = dma.hbm_to_vmem [thread:$0]  %s473_s0, 16, %s16_s10, [#allocation3]  }
  0x13   :  { %s350_s26 = scalar_lea.hbm %s474_s1, 384 }
  0x14   :  { %p351_p8 = scmp.ne.s32.totalorder %s474_s1, %s350_s26  ;;  %p354_p9 = scmp.lt.u32.totalorder %s350_s26, %s474_s1 }
  0x16   :  { %p356_p10 = pnand %p354_p9, %p351_p8 }
  0x18   :  { %359 = shalt.err (!%p356_p10)
}
  0x19   :  { %s360_s3 = scalar_lea.vmem %s400_s12, 384  ;;  %p365_p12 = scmp.lt.s32.totalorder %s400_s12, %s400_s12 }
  0x1a   :  { %p361_p11 = scmp.ne.s32.totalorder %s400_s12, %s360_s3  ;;  %p366_p13 = scmp.lt.s32.totalorder %s360_s3, %s360_s3 }
  0x1c   :  { %p367_p0 = por %p366_p13, %p365_p12 }
  0x1e   :  { %p368_p1 = pnand %p367_p0, %p361_p11 }
  0x20   :  { %371 = shalt.err (!%p368_p1)
}
  0x21   :  { %s378_s0 = smov 64   ;;  %s379_s4 = smov 4  }
  0x22   :  { %30 = dma.hbm_to_vmem [thread:$0]  %s474_s1, 384, %s400_s12, [#allocation5], %s378_s0, %s378_s0, %s379_s4  }
  0x23   :  { %372 = dma.done.wait [#allocation3], 16  }
  0x24   :  { %373 = vsyncadd [#allocation3], 4294967280 }
  0x25   :  { %374 = dma.done.wait [#allocation5], 384  }
  0x26   :  { %375 = vsyncadd [#allocation5], 4294966912  ;;  %v38_v0 = vlaneseq  ;;  %v380_v1 = vmov 0.0   ;;  %vm381_vm0 = vmmov 0   ;;  %v254_v6 = vld [vmem:[#allocation2] ss:$0 sm:$0xff] }
  0x27   :  { %294 = vmatprep.subr.bf16.mxu0 %v380_v1  ;;  %298 = vmatprep.mubr.msk.bf16.mxu0 %vm381_vm0, %v380_v1  ;;  %v382_v7 = vmov 1.0|1.0   ;;  %v325_v8 = vld [vmem:[#allocation4] sm:$0xff]   ;;  %v326_v9 = vld [vmem:[#allocation4 + $0x8] sm:$0xff]   ;;  %vm72_vm7 = vcmask 261120   ;;  %v327_v10 = vld [vmem:[#allocation4 + $0x10] sm:$0xff]  }
  0x28   :  { %v39_v2 = vshrl.u32 %v38_v0, 7  ;;  %286 = vmatprep.subr.bf16.mxu1 %v380_v1  ;;  %290 = vmatprep.mubr.msk.bf16.mxu1 %vm381_vm0, %v380_v1  ;;  %s383_s8 = smov 96   ;;  %s384_s11 = smov 32  }
  0x2a   :  { %v40_v3 = vadd.s32 8, %v39_v2  ;;  %v41_v4 = vadd.s32 16, %v39_v2  ;;  %v42_v5 = vadd.s32 24, %v39_v2  ;;  %vm48_vm1 = vcmp.eq.s32.totalorder %v39_v2, %v254_v6 }
  0x2c   :  { %vm49_vm2 = vcmp.eq.s32.totalorder %v40_v3, %v254_v6  ;;  %vm50_vm3 = vcmp.eq.s32.totalorder %v41_v4, %v254_v6  ;;  %vm51_vm4 = vcmp.eq.s32.totalorder %v42_v5, %v254_v6 }
  0x2d   :  { %vm260_vm5 = vmpackc.low %vm49_vm2, %vm48_vm1 }
  0x2e   :  { %295 = vmatpush3.bf16.msk.msra.mxu0 %vm260_vm5, %v382_v7  ;;  %287 = vmatpush3.bf16.msk.msra.mxu1 %vm260_vm5, %v382_v7  ;;  %vm262_vm6 = vmpackc.low %vm51_vm4, %vm50_vm3 }
  0x2f   :  { %296 = vmatprep.subr.bf16.mxu0 %v380_v1  ;;  %288 = vmatprep.subr.bf16.mxu1 %v380_v1 }
  0x32   :  { %297 = vmatpush3.bf16.msk.msra.mxu0 %vm262_vm6, %v382_v7  ;;  %289 = vmatpush3.bf16.msk.msra.mxu1 %vm262_vm6, %v382_v7 }
  0x33   :  { %302 = vmatprep.subr.bf16.mxu0 %v380_v1 }
  0x35   :  { %299 = vmatmul.mubr.msk.bf16.vlgmr.msra.gmra.mrb[0].mxu0 %vm72_vm7, %v325_v8  ;;  %291 = vmatmul.mubr.msk.bf16.vlgmr.msra.gmra.mrb[0].mxu1 %vm72_vm7, %v326_v9 }
  0x36   :  { %303 = vmatpush3.bf16.msk.msra.mxu0 %vm260_vm5, %v382_v7  ;;  %306 = vmatprep.mubr.msk.bf16.mxu0 %vm381_vm0, %v380_v1 }
  0x37   :  { %304 = vmatprep.subr.bf16.mxu0 %v380_v1 }
  0x3a   :  { %305 = vmatpush3.bf16.msk.msra.mxu0 %vm262_vm6, %v382_v7 }
  0x41   :  { %307 = vmatmul.mubr.msk.bf16.vlgmr.msra.gmra.mrb[0].mxu0 %vm72_vm7, %v327_v10 }
 0x108   :  { %v110_v11 = vpop.f32.mrb[0].mxu1 }
 0x109   :  { %v292_v12 = vpop.f32.mrb[1].mxu1 }
 0x10a   :  { %v113_v13 = vpop.f32.mrb[2].mxu1 }
 0x10b   :  { %v293_v14 = vpop.f32.mrb[3].mxu1 }
 0x114   :  { %v211_v15 = vpop.f32.mrb[0].mxu0 }
 0x115   :  { %v310_v16 = vadd.f32 %v211_v15, %v110_v11  ;;  %v308_v17 = vpop.f32.mrb[1].mxu0 }
 0x116   :  { %v214_v18 = vpop.f32.mrb[2].mxu0 }
 0x117   :  { %220 = vst.msk [vmem:[%s475_s2] sm:$0xff] %vm72_vm7, %v310_v16  ;;  %v311_v19 = vadd.f32 %v214_v18, %v113_v13  ;;  %v309_v20 = vpop.f32.mrb[3].mxu0  ;;  %232 = vrot.lane.b32.xlu1 %v310_v16, %s378_s0  ;;  %224 = vrot.lane.b32.xlu0 %v310_v16, %s383_s8 }
 0x119   :  { %221 = vst.msk [vmem:[%s475_s2 + $0x8] sm:$0xff] %vm72_vm7, %v311_v19 }
 0x11b   :  { %234 = vrot.lane.b32.xlu1 %v311_v19, %s378_s0  ;;  %226 = vrot.lane.b32.xlu0 %v311_v19, %s383_s8 }
 0x11f   :  { %242 = vrot.lane.b32.xlu1 %v311_v19, %s384_s11  ;;  %240 = vrot.lane.b32.xlu0 %v310_v16, %s384_s11 }
 0x189   :  { %v233_v21 = vpop.permute.xlu1 %232  ;;  %v225_v22 = vpop.permute.xlu0 %224 }
 0x18a   :  { %238 = vst.msk [vmem:[%s475_s2 + $0x20] sm:$0xff] %vm72_vm7, %v233_v21  ;;  %230 = vst.msk [vmem:[%s475_s2 + $0x10] sm:$0xff] %vm72_vm7, %v225_v22 }
 0x18d   :  { %v235_v23 = vpop.permute.xlu1 %234  ;;  %v227_v24 = vpop.permute.xlu0 %226 }
 0x18e   :  { %239 = vst.msk [vmem:[%s475_s2 + $0x28] sm:$0xff] %vm72_vm7, %v235_v23  ;;  %231 = vst.msk [vmem:[%s475_s2 + $0x18] sm:$0xff] %vm72_vm7, %v227_v24 }
 0x191   :  { %v243_v25 = vpop.permute.xlu1 %242  ;;  %v241_v26 = vpop.permute.xlu0 %240 }
 0x192   :  { %247 = vst.msk [vmem:[%s475_s2 + $0x38] sm:$0xff] %vm72_vm7, %v243_v25  ;;  %246 = vst.msk [vmem:[%s475_s2 + $0x30] sm:$0xff] %vm72_vm7, %v241_v26 }
 0x193   :  { %252 = vsyncpa [#allocation3], 1 }
 0x194   :  { %253 = vsyncpa [#allocation5], 1 }

// kernel: tpu_custom_call.1
= control target key start
LH: loop header
LB: loop body
LE: loop exit
PB: predicated region body
PF: predicated region fallthrough
CT: control target
= control target key end

     0   :  { %7 = vsyncpa [#allocation3], 0  ;;  %s473_s0 = inlined_call_operand.hbm [shape: s32[1,128], index: 0, kind: input, shape index: {}]   ;;  %s474_s1 = inlined_call_operand.hbm [shape: bf16[3,16,32], index: 1, kind: input, shape index: {}]   ;;  %s475_s2 = inlined_call_operand.vmem [shape: f32[64,32], index: 2, kind: output, shape index: {}]  }
   0x1   :  { %8 = vsyncpa [#allocation5], 0  ;;  %s376_s9 = smov [#allocation2]   ;;  %s377_s11 = smov [#allocation4]  }
   0x2   :  { %s15_s10 = sshll.u32 %s376_s9, 4  ;;  %s24_s12 = sshll.u32 %s377_s11, 4  ;;  %s16_s10 = int_to_ptr.vmem [resolvable:$true] %s15_s10  ;;  %s400_s12 = int_to_ptr.vmem [resolvable:$true] %s24_s12 }
   0x3   :  { %s328_s15 = scalar_lea.hbm %s473_s0, 16 }
   0x4   :  { %p329_p0 = scmp.ne.s32.totalorder %s473_s0, %s328_s15  ;;  %p332_p1 = scmp.lt.u32.totalorder %s328_s15, %s473_s0 }
   0x6   :  { %p334_p2 = pnand %p332_p1, %p329_p0 }
   0x8   :  { %337 = shalt.err (!%p334_p2)
}
   0x9   :  { %s338_s20 = scalar_lea.vmem %s16_s10, 16  ;;  %s342_s21 = scalar_lea.vmem %s16_s10, 32 }
   0xa   :  { %p339_p3 = scmp.ne.s32.totalorder %s16_s10, %s338_s20  ;;  %p343_p4 = scmp.lt.s32.totalorder %s16_s10, %s16_s10 }
   0xb   :  { %p344_p5 = scmp.lt.s32.totalorder %s342_s21, %s338_s20 }
   0xd   :  { %p345_p6 = por %p344_p5, %p343_p4 }
   0xf   :  { %p346_p7 = pnand %p345_p6, %p339_p3 }
  0x11   :  { %349 = shalt.err (!%p346_p7)
}
  0x12   :  { %18 = dma.hbm_to_vmem [thread:$0]  %s473_s0, 16, %s16_s10, [#allocation3]  }
  0x13   :  { %s350_s26 = scalar_lea.hbm %s474_s1, 384 }
  0x14   :  { %p351_p8 = scmp.ne.s32.totalorder %s474_s1, %s350_s26  ;;  %p354_p9 = scmp.lt.u32.totalorder %s350_s26, %s474_s1 }
  0x16   :  { %p356_p10 = pnand %p354_p9, %p351_p8 }
  0x18   :  { %359 = shalt.err (!%p356_p10)
}
  0x19   :  { %s360_s3 = scalar_lea.vmem %s400_s12, 384  ;;  %p365_p12 = scmp.lt.s32.totalorder %s400_s12, %s400_s12 }
  0x1a   :  { %p361_p11 = scmp.ne.s32.totalorder %s400_s12, %s360_s3  ;;  %p366_p13 = scmp.lt.s32.totalorder %s360_s3, %s360_s3 }
  0x1c   :  { %p367_p0 = por %p366_p13, %p365_p12 }
  0x1e   :  { %p368_p1 = pnand %p367_p0, %p361_p11 }
  0x20   :  { %371 = shalt.err (!%p368_p1)
}
  0x21   :  { %s378_s0 = smov 64   ;;  %s379_s4 = smov 4  }
  0x22   :  { %30 = dma.hbm_to_vmem [thread:$0]  %s474_s1, 384, %s400_s12, [#allocation5], %s378_s0, %s378_s0, %s379_s4  }
  0x23   :  { %372 = dma.done.wait [#allocation3], 16  }
  0x24   :  { %373 = vsyncadd [#allocation3], 4294967280 }
  0x25   :  { %374 = dma.done.wait [#allocation5], 384  }
  0x26   :  { %375 = vsyncadd [#allocation5], 4294966912  ;;  %v38_v0 = vlaneseq  ;;  %v380_v1 = vmov 0.0   ;;  %vm381_vm0 = vmmov 0   ;;  %v254_v6 = vld [vmem:[#allocation2] ss:$0 sm:$0xff] }
  0x27   :  { %294 = vmatprep.subr.bf16.mxu0 %v380_v1  ;;  %298 = vmatprep.mubr.msk.bf16.mxu0 %vm381_vm0, %v380_v1  ;;  %v382_v7 = vmov 1.0|1.0   ;;  %v325_v8 = vld [vmem:[#allocation4] sm:$0xff]   ;;  %v326_v9 = vld [vmem:[#allocation4 + $0x8] sm:$0xff]   ;;  %vm72_vm7 = vcmask 261120   ;;  %v327_v10 = vld [vmem:[#allocation4 + $0x10] sm:$0xff]  }
  0x28   :  { %v39_v2 = vshrl.u32 %v38_v0, 7  ;;  %286 = vmatprep.subr.bf16.mxu1 %v380_v1  ;;  %290 = vmatprep.mubr.msk.bf16.mxu1 %vm381_vm0, %v380_v1  ;;  %s383_s8 = smov 96   ;;  %s384_s11 = smov 32  }
  0x2a   :  { %v40_v3 = vadd.s32 8, %v39_v2  ;;  %v41_v4 = vadd.s32 16, %v39_v2  ;;  %v42_v5 = vadd.s32 24, %v39_v2  ;;  %vm48_vm1 = vcmp.eq.s32.totalorder %v39_v2, %v254_v6 }
  0x2c   :  { %vm49_vm2 = vcmp.eq.s32.totalorder %v40_v3, %v254_v6  ;;  %vm50_vm3 = vcmp.eq.s32.totalorder %v41_v4, %v254_v6  ;;  %vm51_vm4 = vcmp.eq.s32.totalorder %v42_v5, %v254_v6 }
  0x2d   :  { %vm260_vm5 = vmpackc.low %vm49_vm2, %vm48_vm1 }
  0x2e   :  { %295 = vmatpush3.bf16.msk.msra.mxu0 %vm260_vm5, %v382_v7  ;;  %287 = vmatpush3.bf16.msk.msra.mxu1 %vm260_vm5, %v382_v7  ;;  %vm262_vm6 = vmpackc.low %vm51_vm4, %vm50_vm3 }
  0x2f   :  { %296 = vmatprep.subr.bf16.mxu0 %v380_v1  ;;  %288 = vmatprep.subr.bf16.mxu1 %v380_v1 }
  0x32   :  { %297 = vmatpush3.bf16.msk.msra.mxu0 %vm262_vm6, %v382_v7  ;;  %289 = vmatpush3.bf16.msk.msra.mxu1 %vm262_vm6, %v382_v7 }
  0x33   :  { %302 = vmatprep.subr.bf16.mxu0 %v380_v1 }
  0x35   :  { %299 = vmatmul.mubr.msk.bf16.vlgmr.msra.gmra.mrb[0].mxu0 %vm72_vm7, %v325_v8  ;;  %291 = vmatmul.mubr.msk.bf16.vlgmr.msra.gmra.mrb[0].mxu1 %vm72_vm7, %v326_v9 }
  0x36   :  { %303 = vmatpush3.bf16.msk.msra.mxu0 %vm260_vm5, %v382_v7  ;;  %306 = vmatprep.mubr.msk.bf16.mxu0 %vm381_vm0, %v380_v1 }
  0x37   :  { %304 = vmatprep.subr.bf16.mxu0 %v380_v1 }
  0x3a   :  { %305 = vmatpush3.bf16.msk.msra.mxu0 %vm262_vm6, %v382_v7 }
  0x41   :  { %307 = vmatmul.mubr.msk.bf16.vlgmr.msra.gmra.mrb[0].mxu0 %vm72_vm7, %v327_v10 }
 0x108   :  { %v110_v11 = vpop.f32.mrb[0].mxu1 }
 0x109   :  { %v292_v12 = vpop.f32.mrb[1].mxu1 }
 0x10a   :  { %v113_v13 = vpop.f32.mrb[2].mxu1 }
 0x10b   :  { %v293_v14 = vpop.f32.mrb[3].mxu1 }
 0x114   :  { %v211_v15 = vpop.f32.mrb[0].mxu0 }
 0x115   :  { %v310_v16 = vadd.f32 %v211_v15, %v110_v11  ;;  %v308_v17 = vpop.f32.mrb[1].mxu0 }
 0x116   :  { %v214_v18 = vpop.f32.mrb[2].mxu0 }
 0x117   :  { %220 = vst.msk [vmem:[%s475_s2] sm:$0xff] %vm72_vm7, %v310_v16  ;;  %v311_v19 = vadd.f32 %v214_v18, %v113_v13  ;;  %v309_v20 = vpop.f32.mrb[3].mxu0  ;;  %232 = vrot.lane.b32.xlu1 %v310_v16, %s378_s0  ;;  %224 = vrot.lane.b32.xlu0 %v310_v16, %s383_s8 }
 0x119   :  { %221 = vst.msk [vmem:[%s475_s2 + $0x8] sm:$0xff] %vm72_vm7, %v311_v19 }
 0x11b   :  { %234 = vrot.lane.b32.xlu1 %v311_v19, %s378_s0  ;;  %226 = vrot.lane.b32.xlu0 %v311_v19, %s383_s8 }
 0x11f   :  { %242 = vrot.lane.b32.xlu1 %v311_v19, %s384_s11  ;;  %240 = vrot.lane.b32.xlu0 %v310_v16, %s384_s11 }
 0x189   :  { %v233_v21 = vpop.permute.xlu1 %232  ;;  %v225_v22 = vpop.permute.xlu0 %224 }
 0x18a   :  { %238 = vst.msk [vmem:[%s475_s2 + $0x20] sm:$0xff] %vm72_vm7, %v233_v21  ;;  %230 = vst.msk [vmem:[%s475_s2 + $0x10] sm:$0xff] %vm72_vm7, %v225_v22 }
 0x18d   :  { %v235_v23 = vpop.permute.xlu1 %234  ;;  %v227_v24 = vpop.permute.xlu0 %226 }
 0x18e   :  { %239 = vst.msk [vmem:[%s475_s2 + $0x28] sm:$0xff] %vm72_vm7, %v235_v23  ;;  %231 = vst.msk [vmem:[%s475_s2 + $0x18] sm:$0xff] %vm72_vm7, %v227_v24 }
 0x191   :  { %v243_v25 = vpop.permute.xlu1 %242  ;;  %v241_v26 = vpop.permute.xlu0 %240 }
 0x192   :  { %247 = vst.msk [vmem:[%s475_s2 + $0x38] sm:$0xff] %vm72_vm7, %v243_v25  ;;  %246 = vst.msk [vmem:[%s475_s2 + $0x30] sm:$0xff] %vm72_vm7, %v241_v26 }
 0x193   :  { %252 = vsyncpa [#allocation3], 1 }
 0x194   :  { %253 = vsyncpa [#allocation5], 1 }

</bundles_post_ra>
